<compile_context>
chip_gen: v7x
topology: tpu7x:2x2x1
jax: 0.10.0
libtpu: 0.0.40
codegen_flags: <defaults>
</compile_context>

<pallas_src>
import functools

import jax
import jax.numpy as jnp
from jax import lax
from jax.experimental import pallas as pl
from jax.experimental.pallas import tpu as pltpu


# -----------------------------------------------------------------------------
# Fused kernel: 2 layers x 2 views of GraphAttentionLayer + 'sum' merge,
# one grid step per batch element.
# -----------------------------------------------------------------------------
def _multiview_attention_kernel(
    x_ref,     # VMEM (1, N, Din)      input features for this batch element
    w0_ref,    # VMEM (Din, 2*H0)      layer-0 block-diagonal weight (pre-transposed)
    a0_ref,    # VMEM (2, 2*H0)        layer-0 neighbor-half attention vectors, packed
    w1_ref,    # VMEM (2*H0, 2*H1)     layer-1 block-diagonal weight (pre-transposed)
    m_ref,     # VMEM (2*H1, H1)       merge matrix [gw0*I ; gw1*I] (softmax(group_weight))
    y_ref,     # VMEM (1, N, H1)       merged output
    *, h0,
):
    n = x_ref.shape[1]
    h1 = y_ref.shape[2]

    x = x_ref[0].astype(jnp.float32)                                     # (N, Din)

    # ---- Layer 0, both views in one pass (block-diagonal weights) ----
    out0 = jnp.clip(jnp.dot(x, w0_ref[...],
                            preferred_element_type=jnp.float32), -1.0, 1.0)   # (N, 2H0)

    # Neighbor scores for both views as a lane-dense (2, N) block straight off
    # the MXU (contract minor dims of both operands; the zero blocks in a0 keep
    # each view's score independent).  Self scores cancel exactly when k == N.
    s = lax.dot_general(a0_ref[...], out0, (((1,), (1,)), ((), ())),
                        preferred_element_type=jnp.float32)                   # (2, N)

    # Row softmax over neighbors.  |s| <= H0 (hardtanh output in [-1,1], a in
    # [0,1]^H0), so for moderate H0 the max-subtraction XLU reduce is skipped.
    if h0 <= 60:
        e = jnp.exp(s)
    else:
        e = jnp.exp(s - jnp.max(s, axis=-1, keepdims=True))
    att = e * pl.reciprocal(jnp.sum(e, axis=-1, keepdims=True), approx=True)  # (2, N)

    # Weighted aggregation: with k == N every output row of a view is the same
    # vector, so only one row per view is ever needed downstream.
    hrows = jnp.dot(att, out0, preferred_element_type=jnp.float32)            # (2, 2H0)

    # Keep the view-0 half of row 0 and the view-1 half of row 1 -> (1, 2H0)
    # concatenated per-view row (the PyTorch concat of the two view outputs).
    lane = lax.broadcasted_iota(jnp.int32, (1, 2 * h0), 1)
    h_cat = jnp.where(lane < h0, hrows[0:1, :], hrows[1:2, :])                # (1, 2H0)

    # ---- Layer 1: attention over identical rows is exactly uniform, i.e. the
    # identity on the row, so the whole layer is one (1,2H0)@(2H0,2H1) matmul
    # + hardtanh.  Merge (softmax(group_weight)-weighted sum) is folded into a
    # tiny (2H1, H1) matmul so no lane slicing / SMEM scalars are needed.
    y_all = jnp.clip(jnp.dot(h_cat, w1_ref[...],
                             preferred_element_type=jnp.float32), -1.0, 1.0)  # (1, 2H1)
    y_row = jnp.dot(y_all, m_ref[...], preferred_element_type=jnp.float32)    # (1, H1)

    # Single broadcast only at the final store (all N output rows are identical).
    y_ref[0] = jnp.broadcast_to(y_row, (n, h1))


# -----------------------------------------------------------------------------
# Wrappers
# -----------------------------------------------------------------------------
@jax.jit
def multiview_attention_forward_batched(xb, params):
    """Fused forward for a batch of inputs.

    xb:     (B, N, in_dim) — one grid step per batch element (weights stay
            VMEM-resident across steps; batch axis is 'parallel' for megacore).
    params: output of preprocess_params (one-time packing, not per forward).
    Returns (B, N, H1) float32.
    """
    b, n, din = xb.shape
    w0, a0, w1, m = params["w0"], params["a0"], params["w1"], params["merge"]
    h0 = a0.shape[1] // 2
    h1 = m.shape[1]

    full = lambda arr: pl.BlockSpec(arr.shape, lambda i: (0,) * arr.ndim)
    kernel = functools.partial(_multiview_attention_kernel, h0=h0)

    # TODO(synk): a k < N generalization needs the pairwise-distance + top-k
    # graph and a flash-style row-tiled grid (bf16 MXU operands, 128-row tiles
    # on v5e vs 256 on v6e/v7x, explicit vmem_limit_bytes for v5e's 16 MiB /
    # v7x's 64 MiB budgets); not needed for the default k = N path below.
    return pl.pallas_call(
        kernel,
        out_shape=jax.ShapeDtypeStruct((b, n, h1), jnp.float32),
        grid=(b,),
        in_specs=[
            pl.BlockSpec((1, n, din), lambda i: (i, 0, 0)),   # per-step input
            full(w0), full(a0), full(w1), full(m),            # VMEM-resident params
        ],
        out_specs=pl.BlockSpec((1, n, h1), lambda i: (i, 0, 0)),
        compiler_params=pltpu.CompilerParams(
            dimension_semantics=("parallel",),                # shards batch on v7x's 2 TCs
        ),
    )(xb, w0, a0, w1, m)


def multiview_attention_forward(x, params):
    """Module-shaped forward: (N, in_dim) -> (N, H1)."""
    return multiview_attention_forward_batched(x[None], params)[0]


# -----------------------------------------------------------------------------
# Parameter init (matches the PyTorch module's init) + one-time preprocessing.
# -----------------------------------------------------------------------------
def init_multiview_attention_params(key, in_dim, hidden_dims, num_views=2):
    assert num_views == 2 and len(hidden_dims) == 2 and in_dim % num_views == 0
    layer_in = [in_dim // num_views] * num_views
    layers = []
    for h in hidden_dims:
        views = []
        for din in layer_in:
            key, kw, ka = jax.random.split(key, 3)
            std = float(din) ** -0.5
            w = jax.random.uniform(kw, (h, din), jnp.float32, -std, std)
            a = jax.random.uniform(ka, (2 * h,), jnp.float32, 0.0, 1.0)
            views.append((w, a))
        layers.append(views)
        layer_in = [h] * num_views
    key, kg = jax.random.split(key)
    gw = jax.random.uniform(kg, (num_views,), jnp.float32,
                            -1.0 / num_views, 1.0 / num_views)
    return {"layers": layers, "group_weight": gw}


def preprocess_params(raw):
    """One-time packing hoisted out of the forward path.

    * Layer-0 weights of both views -> one block-diagonal (Din, 2*H0) matrix
      (pre-transposed, so no in-kernel w.T).
    * Layer-0 attention vectors -> (2, 2*H0): only the *neighbor* half of `a`
      is kept (the self half cancels in the row softmax for k == N); each row
      is zero outside its own view's block.
    * Layer-1 weights -> block-diagonal (2*H0, 2*H1).  Layer-1 `a` is unused:
      its attention is exactly uniform because layer-0 rows are identical.
    * softmax(group_weight) folded into a (2*H1, H1) merge matrix.
    * Everything cast to f32 once.
    """
    (w00, a00), (w01, a01) = raw["layers"][0]
    (w10, a10), (w11, a11) = raw["layers"][1]
    f32 = jnp.float32
    h0, din_v = w00.shape
    h1 = w10.shape[0]

    w0_bd = jnp.zeros((2 * din_v, 2 * h0), f32)
    w0_bd = w0_bd.at[:din_v, :h0].set(jnp.asarray(w00, f32).T)
    w0_bd = w0_bd.at[din_v:, h0:].set(jnp.asarray(w01, f32).T)

    a0 = jnp.zeros((2, 2 * h0), f32)
    a0 = a0.at[0, :h0].set(jnp.asarray(a00[h0:], f32))   # neighbor half, view 0
    a0 = a0.at[1, h0:].set(jnp.asarray(a01[h0:], f32))   # neighbor half, view 1

    w1_bd = jnp.zeros((2 * h0, 2 * h1), f32)
    w1_bd = w1_bd.at[:h0, :h1].set(jnp.asarray(w10, f32).T)
    w1_bd = w1_bd.at[h0:, h1:].set(jnp.asarray(w11, f32).T)

    gw = jax.nn.softmax(jnp.asarray(raw["group_weight"], f32))
    merge = jnp.concatenate([gw[0] * jnp.eye(h1, dtype=f32),
                             gw[1] * jnp.eye(h1, dtype=f32)], axis=0)  # (2*H1, H1)

    return {"w0": w0_bd, "a0": a0, "w1": w1_bd, "merge": merge}


# -----------------------------------------------------------------------------
# Pure-JAX reference with the un-simplified (N, N) attention, for verification.
# -----------------------------------------------------------------------------
def _gat_layer_reference(x, w, a):
    out = jnp.clip(x @ w.T, -1.0, 1.0)
    dout = w.shape[0]
    s1 = out @ a[:dout]
    s2 = out @ a[dout:]
    att = jax.nn.softmax(s1[:, None] + s2[None, :], axis=-1)
    return att @ out


def multiview_attention_reference(x, raw):
    (w00, a00), (w01, a01) = raw["layers"][0]
    (w10, a10), (w11, a11) = raw["layers"][1]
    din_view = w00.shape[1]
    h_v0 = _gat_layer_reference(x[:, :din_view], w00, a00)
    h_v1 = _gat_layer_reference(x[:, din_view:], w01, a01)
    y_v0 = _gat_layer_reference(h_v0, w10, a10)
    y_v1 = _gat_layer_reference(h_v1, w11, a11)
    gw = jax.nn.softmax(raw["group_weight"])
    return gw[0] * y_v0 + gw[1] * y_v1


if __name__ == "__main__":
    key = jax.random.PRNGKey(0)
    key, kx = jax.random.split(key)

    B, N, in_dim = 4, 8, 16          # batch of 4 graphs, 2 views of 8 features each
    hidden_dims = (32, 16)           # per-view widths; merged output is (N, 16)

    xb = jax.random.normal(kx, (B, N, in_dim), dtype=jnp.float32)
    raw = init_multiview_attention_params(key, in_dim, hidden_dims, num_views=2)
    params = preprocess_params(raw)  # one-time packing, not per-forward

    # Batched fused kernel (single pallas_call, grid over the batch).
    yb = multiview_attention_forward_batched(xb, params)
    jax.block_until_ready(yb)
    assert yb.shape == (B, N, hidden_dims[-1])

    # Verify against the un-simplified reference math (full (N,N) softmaxes).
    y_ref = jax.vmap(lambda x: multiview_attention_reference(x, raw))(xb)
    assert jnp.allclose(yb, y_ref, rtol=5e-3, atol=5e-3)

    # Module-shaped single-sample path.
    y0 = multiview_attention_forward(xb[0], params)
    jax.block_until_ready(y0)
    assert y0.shape == (N, hidden_dims[-1])
    assert jnp.allclose(y0, y_ref[0], rtol=5e-3, atol=5e-3)

    print("KERNEL_OK")
</pallas_src>

<mosaic_0001>
module attributes {stable_mosaic.version = 11 : i64} {
  func.func @_multiview_attention_kernel(%arg0: i32, %arg1: memref<1x8x16xf32, #tpu.memory_space<vmem>>, %arg2: memref<16x64xf32, #tpu.memory_space<vmem>>, %arg3: memref<2x64xf32, #tpu.memory_space<vmem>>, %arg4: memref<64x32xf32, #tpu.memory_space<vmem>>, %arg5: memref<32x16xf32, #tpu.memory_space<vmem>>, %arg6: memref<1x8x16xf32, #tpu.memory_space<vmem>>) attributes {dimension_semantics = [#tpu.dimension_semantics<parallel>], iteration_bounds = array<i64: 4>, scalar_prefetch = 0 : i64, scratch_operands = 0 : i64, tpu.core_type = #tpu.core_type<tc>, window_params = [{transform_indices = @transform_0, window_bounds = array<i64: 1, 8, 16>}, {pipeline_mode = #tpu.pipeline_mode<synchronous>, transform_indices = @transform_1, window_bounds = array<i64: 16, 64>}, {pipeline_mode = #tpu.pipeline_mode<synchronous>, transform_indices = @transform_2, window_bounds = array<i64: 2, 64>}, {pipeline_mode = #tpu.pipeline_mode<synchronous>, transform_indices = @transform_3, window_bounds = array<i64: 64, 32>}, {pipeline_mode = #tpu.pipeline_mode<synchronous>, transform_indices = @transform_4, window_bounds = array<i64: 32, 16>}, {transform_indices = @transform_5, window_bounds = array<i64: 1, 8, 16>}]} {
    %c0 = arith.constant 0 : index
    %c0_0 = arith.constant 0 : index
    %c0_1 = arith.constant 0 : index
    %0 = vector.load %arg1[%c0, %c0_0, %c0_1] : memref<1x8x16xf32, #tpu.memory_space<vmem>>, vector<1x8x16xf32>
    %1 = vector.shape_cast %0 : vector<1x8x16xf32> to vector<8x16xf32>
    %c0_2 = arith.constant 0 : index
    %c0_3 = arith.constant 0 : index
    %2 = vector.load %arg2[%c0_2, %c0_3] : memref<16x64xf32, #tpu.memory_space<vmem>>, vector<16x64xf32>
    %cst = arith.constant dense<0.000000e+00> : vector<8x64xf32>
    %3 = tpu.matmul %1, %2, %cst {dimension_numbers = #tpu.dot_dimension_numbers<[1], [0], [0], [1], [0, 0, 1, 1], [], []>} : vector<8x16xf32>, vector<16x64xf32>, vector<8x64xf32> -> vector<8x64xf32>
    %cst_4 = arith.constant -1.000000e+00 : f32
    %cst_5 = arith.constant 1.000000e+00 : f32
    %4 = vector.broadcast %cst_4 : f32 to vector<8x64xf32>
    %5 = arith.maximumf %4, %3 : vector<8x64xf32>
    %6 = vector.broadcast %cst_5 : f32 to vector<8x64xf32>
    %7 = arith.minimumf %6, %5 : vector<8x64xf32>
    %c0_6 = arith.constant 0 : index
    %c0_7 = arith.constant 0 : index
    %8 = vector.load %arg3[%c0_6, %c0_7] : memref<2x64xf32, #tpu.memory_space<vmem>>, vector<2x64xf32>
    %cst_8 = arith.constant dense<0.000000e+00> : vector<2x8xf32>
    %9 = tpu.matmul %8, %7, %cst_8 {dimension_numbers = #tpu.dot_dimension_numbers<[1], [1], [0], [0], [0, 0, 1, 0], [], []>} : vector<2x64xf32>, vector<8x64xf32>, vector<2x8xf32> -> vector<2x8xf32>
    %10 = math.exp %9 : vector<2x8xf32>
    %cst_9 = arith.constant dense<0.000000e+00> : vector<2xf32>
    %11 = vector.multi_reduction <add>, %10, %cst_9 [1] : vector<2x8xf32> to vector<2xf32>
    %12 = vector.shape_cast %11 : vector<2xf32> to vector<2x1xf32>
    %13 = tpu.reciprocal %12 {approx = true} : vector<2x1xf32> -> vector<2x1xf32>
    %14 = vector.broadcast %13 : vector<2x1xf32> to vector<2x8xf32>
    %15 = arith.mulf %10, %14 : vector<2x8xf32>
    %cst_10 = arith.constant dense<0.000000e+00> : vector<2x64xf32>
    %16 = tpu.matmul %15, %7, %cst_10 {dimension_numbers = #tpu.dot_dimension_numbers<[1], [0], [0], [1], [0, 0, 1, 1], [], []>} : vector<2x8xf32>, vector<8x64xf32>, vector<2x64xf32> -> vector<2x64xf32>
    %17 = tpu.iota {dimensions = array<i32: 1>} : vector<1x64xi32>
    %c32_i32 = arith.constant 32 : i32
    %18 = vector.broadcast %c32_i32 : i32 to vector<1x64xi32>
    %19 = arith.cmpi slt, %17, %18 : vector<1x64xi32>
    %20 = vector.extract_strided_slice %16 {offsets = [0, 0], sizes = [1, 64], strides = [1, 1]} : vector<2x64xf32> to vector<1x64xf32>
    %21 = vector.extract_strided_slice %16 {offsets = [1, 0], sizes = [1, 64], strides = [1, 1]} : vector<2x64xf32> to vector<1x64xf32>
    %22 = arith.select %19, %20, %21 : vector<1x64xi1>, vector<1x64xf32>
    %c0_11 = arith.constant 0 : index
    %c0_12 = arith.constant 0 : index
    %23 = vector.load %arg4[%c0_11, %c0_12] : memref<64x32xf32, #tpu.memory_space<vmem>>, vector<64x32xf32>
    %cst_13 = arith.constant dense<0.000000e+00> : vector<1x32xf32>
    %24 = tpu.matmul %22, %23, %cst_13 {dimension_numbers = #tpu.dot_dimension_numbers<[1], [0], [0], [1], [0, 0, 1, 1], [], []>} : vector<1x64xf32>, vector<64x32xf32>, vector<1x32xf32> -> vector<1x32xf32>
    %cst_14 = arith.constant -1.000000e+00 : f32
    %cst_15 = arith.constant 1.000000e+00 : f32
    %25 = vector.broadcast %cst_14 : f32 to vector<1x32xf32>
    %26 = arith.maximumf %25, %24 : vector<1x32xf32>
    %27 = vector.broadcast %cst_15 : f32 to vector<1x32xf32>
    %28 = arith.minimumf %27, %26 : vector<1x32xf32>
    %c0_16 = arith.constant 0 : index
    %c0_17 = arith.constant 0 : index
    %29 = vector.load %arg5[%c0_16, %c0_17] : memref<32x16xf32, #tpu.memory_space<vmem>>, vector<32x16xf32>
    %cst_18 = arith.constant dense<0.000000e+00> : vector<1x16xf32>
    %30 = tpu.matmul %28, %29, %cst_18 {dimension_numbers = #tpu.dot_dimension_numbers<[1], [0], [0], [1], [0, 0, 1, 1], [], []>} : vector<1x32xf32>, vector<32x16xf32>, vector<1x16xf32> -> vector<1x16xf32>
    %31 = vector.shape_cast %30 : vector<1x16xf32> to vector<1x16xf32>
    %32 = vector.broadcast %31 : vector<1x16xf32> to vector<8x16xf32>
    %c0_19 = arith.constant 0 : index
    %c0_20 = arith.constant 0 : index
    %c0_21 = arith.constant 0 : index
    %33 = vector.load %arg6[%c0_19, %c0_20, %c0_21] : memref<1x8x16xf32, #tpu.memory_space<vmem>>, vector<1x8x16xf32>
    %34 = vector.shape_cast %33 : vector<1x8x16xf32> to vector<8x16xf32>
    %35 = vector.shape_cast %32 : vector<8x16xf32> to vector<1x8x16xf32>
    tpu.vector_store %arg6[%c0_19, %c0_20, %c0_21], %35 {strides = array<i32>} : memref<1x8x16xf32, #tpu.memory_space<vmem>>, vector<1x8x16xf32>,
    return
  }
  func.func @transform_0(%arg0: i32) -> (i32, i32, i32) {
    %c0_i32 = arith.constant 0 : i32
    %c0_i32_0 = arith.constant 0 : i32
    %c0_i32_1 = arith.constant 0 : i32
    return %arg0, %c0_i32, %c0_i32_0 : i32, i32, i32
  }
  func.func @transform_1(%arg0: i32) -> (i32, i32) {
    %c0_i32 = arith.constant 0 : i32
    %c0_i32_0 = arith.constant 0 : i32
    %c0_i32_1 = arith.constant 0 : i32
    return %c0_i32, %c0_i32_0 : i32, i32
  }
  func.func @transform_2(%arg0: i32) -> (i32, i32) {
    %c0_i32 = arith.constant 0 : i32
    %c0_i32_0 = arith.constant 0 : i32
    %c0_i32_1 = arith.constant 0 : i32
    return %c0_i32, %c0_i32_0 : i32, i32
  }
  func.func @transform_3(%arg0: i32) -> (i32, i32) {
    %c0_i32 = arith.constant 0 : i32
    %c0_i32_0 = arith.constant 0 : i32
    %c0_i32_1 = arith.constant 0 : i32
    return %c0_i32, %c0_i32_0 : i32, i32
  }
  func.func @transform_4(%arg0: i32) -> (i32, i32) {
    %c0_i32 = arith.constant 0 : i32
    %c0_i32_0 = arith.constant 0 : i32
    %c0_i32_1 = arith.constant 0 : i32
    return %c0_i32, %c0_i32_0 : i32, i32
  }
  func.func @transform_5(%arg0: i32) -> (i32, i32, i32) {
    %c0_i32 = arith.constant 0 : i32
    %c0_i32_0 = arith.constant 0 : i32
    %c0_i32_1 = arith.constant 0 : i32
    return %arg0, %c0_i32, %c0_i32_0 : i32, i32, i32
  }
}

</mosaic_0001>

<bundles_post_ra>
// kernel: multiview_attention_forward_batched.1
= control target key start
LH: loop header
LB: loop body
LE: loop exit
PB: predicated region body
PF: predicated region fallthrough
CT: control target
= control target key end

     0   :  { %10 = vsyncpa [#allocation3], 0  ;;  %s1118_s0 = inlined_call_operand.vmem [shape: f32[4,8,16], index: 0, kind: input, shape index: {}]   ;;  %s1119_s1 = inlined_call_operand.vmem [shape: f32[16,64], index: 1, kind: input, shape index: {}]   ;;  %s1120_s2 = inlined_call_operand.vmem [shape: f32[2,64], index: 2, kind: input, shape index: {}]   ;;  %s1121_s3 = inlined_call_operand.vmem [shape: f32[64,32], index: 3, kind: input, shape index: {}]   ;;  %s1122_s4 = inlined_call_operand.vmem [shape: f32[32,16], index: 4, kind: input, shape index: {}]   ;;  %s1123_s5 = inlined_call_operand.hbm [shape: f32[4,8,16], index: 5, kind: output, shape index: {}]  }
   0x1   :  { %12 = vsyncpa [#allocation3 + $0x1], 0  ;;  %s956_s18 = smov 0   ;;  %s958_s19 = smov 0  }
   0x2   :  { %s960_s20 = smov 0   ;;  %s962_s21 = smov 0  }
   0x3 LB: > { %s977_s22 = sadd.s32 4294967295, %s920_s21   ;;  %s705_s23 = sadd.s32 4294967294, %s920_s21   ;;  %s920_s21 = sphi %s962_s21, %s1129_s21   ;;  %s916_s20 = sphi %s960_s20, %s1128_s20   ;;  %s912_s19 = sphi %s958_s19, %s1127_s19   ;;  %s908_s18 = sphi %s956_s18, %s1126_s18  }
   0x4   : > { %s981_s24 = sadd.s32 1, %s920_s21   ;;  %s135_s25 = sadd.s32 1, %s916_s20 }
   0x5   : > { %s132_s26 = ssub.s32 %s920_s21, %s981_s24  ;;  %p145_p0 = scmp.ne.s32.totalorder %s916_s20, %s912_s19 }
   0x6   : > { %p133_p1 = scmp.eq.s32.totalorder %s132_s26, 0  ;;  %p146_p2 = scmp.eq.s32.totalorder %s977_s22, 3 }
   0x7   : > { %p151_p3 = scmp.ne.s32.totalorder %s912_s19, %s908_s18  ;;  %p152_p4 = scmp.eq.s32.totalorder %s705_s23, 3 }
   0x8   : > { %s992_s27 = scalar_select %p133_p1, %s916_s20, %s135_s25  }
   0x9   : > { %p994_p5 = por %p146_p2, %p145_p0  ;;  %p998_p6 = por %p152_p4, %p151_p3 }
   0xa   : > { %p708_p7 = scmp.ge.s32.totalorder %s920_s21, 1  ;;  %p189_p8 = scmp.lt.s32.totalorder %s920_s21, 5 }
   0xc   : > { %p190_p9 = pnand %p708_p7, %p189_p8 }
   0xd   : > { %v221_v0 = vld [vmem:[%s1119_s1] sm:$0xff] (!%p190_p9)  ;;  %v222_v1 = vld [vmem:[%s1119_s1 + $0x8] sm:$0xff] (!%p190_p9)  ;;  %p216_p10 = scmp.lt.s32.totalorder (!%p190_p9), %s977_s22, 3  ;;  %v922_v2 = vmov (!%p190_p9), 0.0|0.0   ;;  %vm923_vm0 = vmmov (!%p190_p9), 0   ;;  %v924_v4 = vmov (!%p190_p9), 0.0   ;;  %v459_v33 = vlaneseq (!%p190_p9) }
   0xe   : > { %193 = sbr.rel (%p190_p9) target bundleno = 1281 (0x501), region = 40  ;;  %791 = vmatprep.subr.bf16.mxu0 (!%p190_p9), %v922_v2  ;;  %v792_v3 = vpack.c.bf16 (!%p190_p9), %v222_v1, %v221_v0  ;;  %748 = vmatprep.mubr.msk.f32.mxu0 (!%p190_p9), %vm923_vm0, %v924_v4  ;;  %vm223_vm1 = vcmask (!%p190_p9), 130048   ;;  %vm300_vm2 = vcmask (!%p190_p9), 523264   ;;  %v299_v9 = vld [vmem:[%s1120_s2] sm:$0x3] (!%p190_p9)  ;;  %vm379_vm3 = vcmask (!%p190_p9), 58368  }
   0xf   : > { %751 = vmatprep.subr.mxu1 (!%p190_p9), %v924_v4  ;;  %753 = vmatprep.mubr.msk.f32.mxu1 (!%p190_p9), %vm923_vm0, %v924_v4  ;;  %v466_v15 = vld [vmem:[%s1121_s3] sm:$0xff] (!%p190_p9)  ;;  %v467_v16 = vld [vmem:[%s1121_s3 + $0x8] sm:$0xff] (!%p190_p9)  ;;  %v468_v17 = vld [vmem:[%s1121_s3 + $0x10] sm:$0xff] (!%p190_p9)  ;;  %vm385_vm4 = vcmask (!%p190_p9), 64512   ;;  %v460_v34 = vand.u32 (!%p190_p9), 127, %v459_v33  ;;  %vm553_vm6 = vcmask (!%p190_p9), 261120  }
  0x10   : > { %793 = vmatpush3.bf16.msra.mxu0 (!%p190_p9), %v792_v3  ;;  %v795_v18 = vpack.c.bf16 (!%p190_p9), %v467_v16, %v466_v15  ;;  %v469_v19 = vld [vmem:[%s1121_s3 + $0x18] sm:$0xff] (!%p190_p9)  ;;  %v470_v21 = vld [vmem:[%s1121_s3 + $0x20] sm:$0xff] (!%p190_p9)  ;;  %v471_v22 = vld [vmem:[%s1121_s3 + $0x28] sm:$0xff] (!%p190_p9)  ;;  %s213_s8 = sand.u32 (!%p190_p9), 1, %s912_s19   ;;  %v628_v45 = vshrl.u32 (!%p190_p9), %v459_v33, 7 }
  0x11   : > { %756 = vmatprep.subr.mxu0 (!%p190_p9), %v924_v4  ;;  %v798_v20 = vpack.c.bf16 (!%p190_p9), %v469_v19, %v468_v17  ;;  %v801_v23 = vpack.c.bf16 (!%p190_p9), %v471_v22, %v470_v21  ;;  %v472_v27 = vld [vmem:[%s1121_s3 + $0x30] sm:$0xff] (!%p190_p9)  ;;  %v473_v28 = vld [vmem:[%s1121_s3 + $0x38] sm:$0xff] (!%p190_p9)  ;;  %v549_v30 = vld [vmem:[%s1122_s4] sm:$0xff] (!%p190_p9)  ;;  %vm461_vm5 = vcmp.lt.s32.totalorder (!%p190_p9), %v460_v34, 32  ;;  %s633_s16 = scalar_lea.sflag (!%p190_p9), [#allocation3], %s213_s8 }
  0x12   : > { %v804_v29 = vpack.c.bf16 (!%p190_p9), %v473_v28, %v472_v27  ;;  %v550_v31 = vld [vmem:[%s1122_s4 + $0x8] sm:$0xff] (!%p190_p9)  ;;  %v551_v39 = vld [vmem:[%s1122_s4 + $0x10] sm:$0xff] (!%p190_p9)  ;;  %v552_v40 = vld [vmem:[%s1122_s4 + $0x18] sm:$0xff] (!%p190_p9)  ;;  %v629_v46 = vsub.s32 (!%p190_p9), 0, %v628_v45 }
  0x13   : > { %v807_v32 = vpack.c.bf16 (!%p190_p9), %v550_v31, %v549_v30  ;;  %v810_v41 = vpack.c.bf16 (!%p190_p9), %v552_v40, %v551_v39 }
  0x15   : > { %s217_s9 = scalar_select %p216_p10, %s977_s22, 3 }
  0x17   : > { %s710_s10 = sshll.u32 %s217_s9, 3  ;;  %s709_s9 = sshll.u32 %s213_s8, 3 }
  0x18   : > { %s219_s13 = scalar_lea.vmem %s1118_s0, %s710_s10  ;;  %s720_s10 = sshll.u32 %s977_s22, 7 }
  0x19   : > { %v220_v5 = vld [vmem:[%s219_s13] sm:$0xff]  ;;  %s215_s11 = scalar_lea.vmem [#allocation2], %s709_s9  ;;  %s1075_s15 = scalar_lea.hbm %s1123_s5, %s720_s10 }
  0x1a   : > { %749 = vmatmul.mubr.msk.f32.vlgmr.msra.gmra.mrb[0].mxu0 %vm223_vm1, %v220_v5  ;;  %s646_s12 = sshll.u32 %s215_s11, 4  ;;  %s925_s22 = smov [#allocation2]   ;;  %s1077_s12 = int_to_ptr.vmem [resolvable:$true] %s646_s12 }
  0x1b   : > { %758 = vmatprep.mubr.msk.f32.mxu0 %vm923_vm0, %v924_v4  ;;  %s858_s17 = scalar_lea.vmem %s1077_s12, 128  ;;  %s862_s23 = sshll.u32 %s925_s22, 4  ;;  %s863_s23 = int_to_ptr.vmem [resolvable:$false] %s862_s23 }
  0x1c   : > { %p859_p11 = scmp.ne.s32.totalorder %s1077_s12, %s858_s17  ;;  %s864_s25 = scalar_lea.vmem %s863_s23, 256 }
  0x1d   : > { %p865_p0 = scmp.lt.s32.totalorder %s1077_s12, %s863_s23  ;;  %p866_p1 = scmp.lt.s32.totalorder %s864_s25, %s858_s17 }
  0x1e   : > { %p860_p12 = pnand %p859_p11, %p994_p5 }
  0x1f   : > { %p867_p2 = por %p866_p1, %p865_p0 }
  0x20   : > { %p861_p13 = pneg %p860_p12 }
  0x22   : > { %p868_p3 = pnand %p867_p2, %p861_p13 }
  0xed   : > { %v293_v6 = vpop.f32.mrb[0].mxu0 }
  0xee   : > { %v712_v7 = vclamps-f32 %v293_v6, 1.0  ;;  %v750_v8 = vpop.f32.mrb[1].mxu0 }
  0xf0   : > { %752 = vmatpush3.xpose.msk.msra.mxu1 %vm300_vm2, %v712_v7  ;;  %757 = vmatpush3.msra.mxu0 %v712_v7 }
  0xf1   : > { %794 = vmatprep.subr.bf16.mxu1 %v922_v2  ;;  %806 = vmatprep.subr.bf16.mxu0 %v922_v2 }
  0xf3   : > { %754 = vmatmul.mubr.msk.f32.vlgmr.msra.gmra.mrb[0].mxu1 %vm300_vm2, %v299_v9 }
  0xf4   : > { %777 = vmatprep.mubr.msk.f32.mxu1 %vm923_vm0, %v924_v4  ;;  %796 = vmatpush3.bf16.msra.mxu1 %v795_v18 }
  0xf5   : > { %797 = vmatprep.subr.bf16.mxu1 %v922_v2 }
  0xf8   : > { %799 = vmatpush3.bf16.msra.mxu1 %v798_v20 }
  0xf9   : > { %800 = vmatprep.subr.bf16.mxu1 %v922_v2 }
  0xfc   : > { %802 = vmatpush3.bf16.msra.mxu1 %v801_v23 }
  0xfd   : > { %803 = vmatprep.subr.bf16.mxu1 %v922_v2 }
 0x100   : > { %805 = vmatpush3.bf16.msra.mxu1 %v804_v29 }
 0x1c6   : > { %v373_v10 = vpop.f32.mrb[0].mxu1 }
 0x1c7   : > { %v377_v11 = vmul.f32 1.442695, %v373_v10  ;;  %v755_v12 = vpop.f32.mrb[1].mxu1 }
 0x1c9   : > { %854 = vpow2.f32 %v377_v11 }
 0x1d3   : > { %v855_v13 = vpop.eup %854 }
 0x1d4   : > { %v380_v14 = vsel %vm379_vm3, %v855_v13, 0.0 }
 0x1d5   : > { %381 = vadd.xlane.f32.xlu0 %v380_v14 }
 0x262   : > { %v382_v24 = vpop.xlane.xlu0 %381 }
 0x263   : > { %856 = vrcp.f32 %v382_v24 }
 0x26d   : > { %v857_v25 = vpop.eup %856 }
 0x26e   : > { %v384_v26 = vmul.f32 %v857_v25, %v855_v13 }
 0x270   : > { %759 = vmatmul.mubr.msk.f32.vlgmr.msra.gmra.mrb[2].mxu0 %vm385_vm4, %v384_v26 }
 0x271   : > { %788 = vmatprep.mubr.msk.f32.mxu0 %vm923_vm0, %v924_v4  ;;  %808 = vmatpush3.bf16.msra.mxu0 %v807_v32 }
 0x272   : > { %809 = vmatprep.subr.bf16.mxu0 %v922_v2 }
 0x275   : > { %811 = vmatpush3.bf16.msra.mxu0 %v810_v41 }
 0x343   : > { %v455_v35 = vpop.f32.mrb[2].mxu0 }
 0x344   : > { %v463_v36 = vrot.slane %v455_v35, 1  ;;  %v760_v37 = vpop.f32.mrb[3].mxu0 }
 0x346   : > { %v465_v38 = vsel %vm461_vm5, %v455_v35, %v463_v36 }
 0x347   : > { %778 = vmatmul.mubr.msk.f32.vlgmr.msra.gmra.mrb[2].mxu1 %vm300_vm2, %v465_v38 }
 0x41a   : > { %v543_v42 = vpop.f32.mrb[2].mxu1 }
 0x41b   : > { %v717_v43 = vclamps-f32 %v543_v42, 1.0  ;;  %v779_v44 = vpop.f32.mrb[3].mxu1 }
 0x41d   : > { %789 = vmatmul.mubr.msk.f32.vlgmr.msra.gmra.mrb[4].mxu0 %vm553_vm6, %v717_v43 }
 0x4f0   : > { %v623_v47 = vpop.f32.mrb[4].mxu0 }
 0x4f1   : > { %v630_v48 = vrot.slane %v623_v47, %v629_v46  ;;  %v790_v49 = vpop.f32.mrb[5].mxu0 }
 0x4f3   : > { %631 = vst.msk [vmem:[%s215_s11] sm:$0xff] %vm223_vm1, %v630_v48 }
 0x4f4   : > { %871 = shalt.err (!%p868_p3)
}
 0x4f5   : > { %s872_s26 = scalar_lea.hbm %s1075_s15, 128  ;;  %s876_s7 = scalar_lea.hbm %s1123_s5, 512 }
 0x4f6   : > { %p873_p4 = scmp.ne.s32.totalorder %s1075_s15, %s872_s26  ;;  %p877_p9 = scmp.lt.u32.totalorder %s1075_s15, %s1123_s5 }
 0x4f7   : > { %p878_p10 = scmp.lt.u32.totalorder %s876_s7, %s872_s26  ;;  %p880_p12 = scmp.lt.u32.totalorder %s872_s26, %s1075_s15 }
 0x4f8   : > { %p874_p7 = pnand %p873_p4, %p994_p5 }
 0x4f9   : > { %p879_p11 = por %p878_p10, %p877_p9 }
 0x4fa   : > { %p875_p8 = pneg %p874_p7 }
 0x4fb   : > { %p881_p13 = por %p880_p12, %p879_p11 }
 0x4fd   : > { %p882_p0 = pnand %p881_p13, %p875_p8 }
 0x4ff   : > { %885 = shalt.err (!%p882_p0)
}
 0x500   : > { %812 = dma.vmem_to_hbm [thread:$0]  (%p994_p5), %s1077_s12, 128, %s1075_s15, %s633_s16  }
 0x501 PF: > { %p818_p1 = scmp.ge.s32.totalorder %s920_s21, 2  ;;  %s658_s10 = sand.u32 1, %s908_s18  }
 0x502   : > { %s659_s11 = scalar_lea.sflag [#allocation3], %s658_s10 }
 0x503   : > { %p815_p2 = pnand %p818_p1, %p998_p6 }
 0x505   : > { %903 = dma.done.wait (!%p815_p2), %s659_s11, 128  }
 0x506   : > { %905 = vsyncadd (!%p815_p2), %s659_s11, 4294967168  ;;  %p15_p3 = scmp.ge.s32.totalorder %s981_s24, 6   ;;  %s1126_s18 = smov %s912_s19 }
 0x507   : > { %s1127_s19 = smov %s916_s20  ;;  %s1128_s20 = smov %s992_s27 }
 0x508   : > { %s1129_s21 = smov %s981_s24  ;;  %17 = sbr.rel (!%p15_p3) target bundleno = 3 (0x3), region = 75 }
 0x50f   :  { %664 = vsyncpa [#allocation3], 1 }
 0x510   :  { %666 = vsyncpa [#allocation3 + $0x1], 1 }

</bundles_post_ra>
